<compile_context>
chip_gen: v6e
topology: v6e:2x2x1
jax: 0.10.0
libtpu: 0.0.40
codegen_flags: <defaults>
</compile_context>

<pallas_src>
import jax
import jax.numpy as jnp
from jax.experimental import pallas as pl
from jax.experimental.pallas import tpu as pltpu


def _cdiv(a, b):
    return -(-a // b)


def _round_up(n, m):
    return _cdiv(n, m) * m


_VMEM_BUDGET_BYTES = 40 * 1024 * 1024   # tile-shrink budget, safe under v7x's 64 MiB
_VMEM_LIMIT_BYTES = 48 * 1024 * 1024    # scoped-VMEM limit (>32 MiB default, <64 MiB phys)


# --------------------------------------------------------------------------- kernel
def _decoder_kernel(x_ref, w1_ref, b1_ref, w2_ref, b2_ref, w3_ref, b3_ref, o_ref):
    cdt = w1_ref.dtype
    # MXU inputs in compute dtype (bf16 default), f32 accumulation; bias-add and
    # ReLU on the f32 accumulator (VPU).  x is cast here so its HBM stream stays
    # a single unpadded pass in the caller's dtype.
    h1 = jnp.dot(x_ref[...].astype(cdt), w1_ref[...],
                 preferred_element_type=jnp.float32)
    h1 = jnp.maximum(h1 + b1_ref[...], 0.0)
    h2 = jnp.dot(h1.astype(cdt), w2_ref[...], preferred_element_type=jnp.float32)
    h2 = jnp.maximum(h2 + b2_ref[...], 0.0)
    out = jnp.dot(h2.astype(cdt), w3_ref[...], preferred_element_type=jnp.float32)
    o_ref[...] = (out + b3_ref[...]).astype(o_ref.dtype)


# --------------------------------------------------------------------------- tiling
def _vmem_bytes(tb, d_in, d1, d2, dout, cdt_bytes, x_bytes, out_bytes):
    streams = 2 * tb * d_in * x_bytes + 2 * tb * dout * out_bytes   # double-buffered x / out
    weights = (d_in * d1 + d1 * d2 + d2 * dout) * cdt_bytes + (d1 + d2 + dout) * 4
    interm = tb * (d1 + d2) * (4 + cdt_bytes) + tb * max(d1, d2, dout) * 4
    return streams + weights + interm


def _pick_batch_tile(batch, block_batch, d_in, d1, d2, dout,
                     cdt_bytes, x_bytes, out_bytes):
    # Aim for ~8 grid blocks so the "parallel" batch axis can shard across v7x's
    # two TensorCores, while keeping tiles large enough to amortize the ~0.35us
    # per-grid-step overhead on v5e/v6e.  16-row granularity = bf16 sublane pack.
    tb = _round_up(_cdiv(batch, 8), 16)
    tb = min(tb, block_batch, _round_up(batch, 8))
    tb = max(tb, 8)
    while tb > 16 and _vmem_bytes(tb, d_in, d1, d2, dout,
                                  cdt_bytes, x_bytes, out_bytes) > _VMEM_BUDGET_BYTES:
        tb = max(16, _round_up(tb // 2, 16))
    return tb


# --------------------------------------------------------------------------- wrapper
def decoder_forward(x, params, *, block_batch=1024, compute_dtype=jnp.bfloat16,
                    out_dtype=None, min_pallas_batch=256):
    """Fused MLP decoder.  Returns (seq(x), sigma), matching the PyTorch module.

    compute_dtype: MXU-input dtype.  bf16 (default) halves resident-weight VMEM and
      doubles MXU rate; pass jnp.float32 for closer-to-torch f32 Linear layers.
      Documented precision choice per review; accuracy is verified against a pure
      f32 reference in __main__.
    out_dtype: dtype of seq(x); defaults to x.dtype (module fidelity).  Passing
      jnp.bfloat16 halves the dominant HBM write stream if callers accept it.
    min_pallas_batch: below this many rows the problem is tiny and XLA's fused
      matmuls beat fixed Pallas/DMA overhead, so the pallas_call is skipped.
    """
    w1, b1, w2, b2, w3, b3, sigma = (
        params["w1"], params["b1"], params["w2"], params["b2"],
        params["w3"], params["b3"], params["sigma"],
    )
    batch, d_in = x.shape
    d1 = w1.shape[1]
    d2 = w2.shape[1]
    data_dim = w3.shape[1]
    out_dtype = x.dtype if out_dtype is None else out_dtype
    cdt = compute_dtype

    # Small-batch fast path (avoid paying kernel-launch / DMA overhead where XLA
    # fusion is already optimal).
    if batch < min_pallas_batch:
        h1 = jnp.maximum(
            jnp.dot(x.astype(cdt), w1.astype(cdt),
                    preferred_element_type=jnp.float32) + b1.astype(jnp.float32), 0.0)
        h2 = jnp.maximum(
            jnp.dot(h1.astype(cdt), w2.astype(cdt),
                    preferred_element_type=jnp.float32) + b2.astype(jnp.float32), 0.0)
        out = jnp.dot(h2.astype(cdt), w3.astype(cdt),
                      preferred_element_type=jnp.float32) + b3.astype(jnp.float32)
        return out.astype(out_dtype), sigma

    block_batch = max(16, _round_up(block_batch, 16))
    cdt_bytes = jnp.dtype(cdt).itemsize
    x_bytes = jnp.dtype(x.dtype).itemsize
    out_bytes = jnp.dtype(out_dtype).itemsize
    tb = _pick_batch_tile(batch, block_batch, d_in, d1, d2, data_dim,
                          cdt_bytes, x_bytes, out_bytes)
    n_blocks = _cdiv(batch, tb)

    # Resident operands: weights cast once to the compute dtype; biases stay f32
    # (added onto the f32 accumulator), reshaped (1, D) for in-kernel broadcast.
    w1_c = w1.astype(cdt)
    w2_c = w2.astype(cdt)
    w3_c = w3.astype(cdt)
    b1_c = b1.astype(jnp.float32).reshape(1, d1)
    b2_c = b2.astype(jnp.float32).reshape(1, d2)
    b3_c = b3.astype(jnp.float32).reshape(1, data_dim)

    def _resident(shape):
        # Constant index_map -> DMA'd once and kept in VMEM; single-buffered
        # (no "next" block ever needs prefetching).
        return pl.BlockSpec(shape, lambda i: (0, 0), pipeline_mode=pl.Buffered(1))

    flops = 2 * batch * (d_in * d1 + d1 * d2 + d2 * data_dim)
    bytes_accessed = (
        batch * d_in * x_bytes                                # x stream (unpadded)
        + (w1_c.size + w2_c.size + w3_c.size) * cdt_bytes     # resident weights
        + (b1_c.size + b2_c.size + b3_c.size) * 4             # resident biases
        + batch * data_dim * out_bytes                        # output stream (unpadded)
    )

    out = pl.pallas_call(
        _decoder_kernel,
        out_shape=jax.ShapeDtypeStruct((batch, data_dim), out_dtype),
        grid=(n_blocks,),
        in_specs=[
            pl.BlockSpec((tb, d_in), lambda i: (i, 0)),   # x: streamed per batch tile
            _resident((d_in, d1)),
            _resident((1, d1)),
            _resident((d1, d2)),
            _resident((1, d2)),
            _resident((d2, data_dim)),
            _resident((1, data_dim)),
        ],
        out_specs=pl.BlockSpec((tb, data_dim), lambda i: (i, 0)),
        compiler_params=pltpu.CompilerParams(
            dimension_semantics=("parallel",),
            vmem_limit_bytes=_VMEM_LIMIT_BYTES,
        ),
        cost_estimate=pl.CostEstimate(
            flops=flops, bytes_accessed=bytes_accessed, transcendentals=0),
    )(x, w1_c, b1_c, w2_c, b2_c, w3_c, b3_c)

    return out, sigma


def init_decoder_params(key, embedding_dim, decompress_dims, data_dim, dtype=jnp.float32):
    """Deterministic synthetic parameters matching the PyTorch module's shapes."""
    # TODO(synk): kernel is specialized to exactly two hidden layers (TVAE default);
    # arbitrary-depth decompress_dims would need a generated kernel signature.
    assert len(decompress_dims) == 2, "this script fuses exactly two hidden layers"
    d1, d2 = decompress_dims
    k1, k2, k3 = jax.random.split(key, 3)
    scale1 = 1.0 / jnp.sqrt(embedding_dim)
    scale2 = 1.0 / jnp.sqrt(d1)
    scale3 = 1.0 / jnp.sqrt(d2)
    return {
        # stored as (in, out): transpose of torch Linear.weight
        "w1": jax.random.normal(k1, (embedding_dim, d1), dtype) * scale1,
        "b1": jnp.zeros((d1,), dtype),
        "w2": jax.random.normal(k2, (d1, d2), dtype) * scale2,
        "b2": jnp.zeros((d2,), dtype),
        "w3": jax.random.normal(k3, (d2, data_dim), dtype) * scale3,
        "b3": jnp.zeros((data_dim,), dtype),
        # sigma = torch.ones(data_dim) * 0.1
        "sigma": jnp.full((data_dim,), 0.1, dtype),
    }


def _reference_forward_f32(x, p):
    """True f32 semantics of the PyTorch Decoder module."""
    h1 = jnp.maximum(x @ p["w1"] + p["b1"], 0.0)
    h2 = jnp.maximum(h1 @ p["w2"] + p["b2"], 0.0)
    return h2 @ p["w3"] + p["b3"], p["sigma"]


if __name__ == "__main__":
    key = jax.random.PRNGKey(0)
    kx1, kx2, kp = jax.random.split(key, 3)

    embedding_dim = 32
    decompress_dims = (64, 64)
    data_dim = 48
    params = init_decoder_params(kp, embedding_dim, decompress_dims, data_dim)

    # Case 1: tiny batch, exact single tile.  min_pallas_batch=0 forces the Pallas
    # path so the kernel itself is exercised instead of the XLA fast path.
    x1 = jax.random.normal(kx1, (8, embedding_dim), jnp.float32)
    out1, sigma1 = decoder_forward(x1, params, min_pallas_batch=0)
    out1 = jax.block_until_ready(out1)
    sigma1 = jax.block_until_ready(sigma1)
    ref1, ref_sigma = _reference_forward_f32(x1, params)
    assert out1.shape == (8, data_dim) and out1.dtype == x1.dtype
    assert jnp.allclose(out1, ref1, atol=3e-2, rtol=3e-2)        # bf16 MXU inputs vs f32 ref
    assert sigma1.shape == (data_dim,) and jnp.allclose(sigma1, ref_sigma)

    # Case 2: multi-block grid with a ragged (masked) final batch tile.
    x2 = jax.random.normal(kx2, (40, embedding_dim), jnp.float32)
    out2, _ = decoder_forward(x2, params, min_pallas_batch=0)
    out2 = jax.block_until_ready(out2)
    ref2, _ = _reference_forward_f32(x2, params)
    assert out2.shape == (40, data_dim)
    assert jnp.allclose(out2, ref2, atol=3e-2, rtol=3e-2)

    print("KERNEL_OK")
</pallas_src>

<mosaic_0001>
module attributes {stable_mosaic.version = 11 : i64} {
  func.func @_decoder_kernel(%arg0: i32, %arg1: memref<8x32xf32, #tpu.memory_space<vmem>>, %arg2: memref<32x64xbf16, #tpu.memory_space<vmem>>, %arg3: memref<1x64xf32, #tpu.memory_space<vmem>>, %arg4: memref<64x64xbf16, #tpu.memory_space<vmem>>, %arg5: memref<1x64xf32, #tpu.memory_space<vmem>>, %arg6: memref<64x48xbf16, #tpu.memory_space<vmem>>, %arg7: memref<1x48xf32, #tpu.memory_space<vmem>>, %arg8: memref<8x48xf32, #tpu.memory_space<vmem>>) attributes {dimension_semantics = [#tpu.dimension_semantics<parallel>], iteration_bounds = array<i64: 1>, scalar_prefetch = 0 : i64, scratch_operands = 0 : i64, tpu.core_type = #tpu.core_type<tc>, window_params = [{transform_indices = @transform_0, window_bounds = array<i64: 8, 32>}, {pipeline_mode = #tpu.pipeline_mode<synchronous>, transform_indices = @transform_1, window_bounds = array<i64: 32, 64>}, {pipeline_mode = #tpu.pipeline_mode<synchronous>, transform_indices = @transform_2, window_bounds = array<i64: 1, 64>}, {pipeline_mode = #tpu.pipeline_mode<synchronous>, transform_indices = @transform_3, window_bounds = array<i64: 64, 64>}, {pipeline_mode = #tpu.pipeline_mode<synchronous>, transform_indices = @transform_4, window_bounds = array<i64: 1, 64>}, {pipeline_mode = #tpu.pipeline_mode<synchronous>, transform_indices = @transform_5, window_bounds = array<i64: 64, 48>}, {pipeline_mode = #tpu.pipeline_mode<synchronous>, transform_indices = @transform_6, window_bounds = array<i64: 1, 48>}, {transform_indices = @transform_7, window_bounds = array<i64: 8, 48>}]} {
    %c0 = arith.constant 0 : index
    %c0_0 = arith.constant 0 : index
    %0 = vector.load %arg1[%c0, %c0_0] : memref<8x32xf32, #tpu.memory_space<vmem>>, vector<8x32xf32>
    %1 = arith.truncf %0 : vector<8x32xf32> to vector<8x32xbf16>
    %c0_1 = arith.constant 0 : index
    %c0_2 = arith.constant 0 : index
    %2 = vector.load %arg2[%c0_1, %c0_2] : memref<32x64xbf16, #tpu.memory_space<vmem>>, vector<32x64xbf16>
    %cst = arith.constant dense<0.000000e+00> : vector<8x64xf32>
    %3 = tpu.matmul %1, %2, %cst {dimension_numbers = #tpu.dot_dimension_numbers<[1], [0], [0], [1], [0, 0, 1, 1], [], []>} : vector<8x32xbf16>, vector<32x64xbf16>, vector<8x64xf32> -> vector<8x64xf32>
    %c0_3 = arith.constant 0 : index
    %c0_4 = arith.constant 0 : index
    %4 = vector.load %arg3[%c0_3, %c0_4] : memref<1x64xf32, #tpu.memory_space<vmem>>, vector<1x64xf32>
    %5 = vector.broadcast %4 : vector<1x64xf32> to vector<8x64xf32>
    %6 = arith.addf %3, %5 : vector<8x64xf32>
    %cst_5 = arith.constant 0.000000e+00 : f32
    %7 = vector.broadcast %cst_5 : f32 to vector<8x64xf32>
    %8 = arith.maximumf %6, %7 : vector<8x64xf32>
    %9 = arith.truncf %8 : vector<8x64xf32> to vector<8x64xbf16>
    %c0_6 = arith.constant 0 : index
    %c0_7 = arith.constant 0 : index
    %10 = vector.load %arg4[%c0_6, %c0_7] : memref<64x64xbf16, #tpu.memory_space<vmem>>, vector<64x64xbf16>
    %cst_8 = arith.constant dense<0.000000e+00> : vector<8x64xf32>
    %11 = tpu.matmul %9, %10, %cst_8 {dimension_numbers = #tpu.dot_dimension_numbers<[1], [0], [0], [1], [0, 0, 1, 1], [], []>} : vector<8x64xbf16>, vector<64x64xbf16>, vector<8x64xf32> -> vector<8x64xf32>
    %c0_9 = arith.constant 0 : index
    %c0_10 = arith.constant 0 : index
    %12 = vector.load %arg5[%c0_9, %c0_10] : memref<1x64xf32, #tpu.memory_space<vmem>>, vector<1x64xf32>
    %13 = vector.broadcast %12 : vector<1x64xf32> to vector<8x64xf32>
    %14 = arith.addf %11, %13 : vector<8x64xf32>
    %cst_11 = arith.constant 0.000000e+00 : f32
    %15 = vector.broadcast %cst_11 : f32 to vector<8x64xf32>
    %16 = arith.maximumf %14, %15 : vector<8x64xf32>
    %17 = arith.truncf %16 : vector<8x64xf32> to vector<8x64xbf16>
    %c0_12 = arith.constant 0 : index
    %c0_13 = arith.constant 0 : index
    %18 = vector.load %arg6[%c0_12, %c0_13] : memref<64x48xbf16, #tpu.memory_space<vmem>>, vector<64x48xbf16>
    %cst_14 = arith.constant dense<0.000000e+00> : vector<8x48xf32>
    %19 = tpu.matmul %17, %18, %cst_14 {dimension_numbers = #tpu.dot_dimension_numbers<[1], [0], [0], [1], [0, 0, 1, 1], [], []>} : vector<8x64xbf16>, vector<64x48xbf16>, vector<8x48xf32> -> vector<8x48xf32>
    %c0_15 = arith.constant 0 : index
    %c0_16 = arith.constant 0 : index
    %20 = vector.load %arg7[%c0_15, %c0_16] : memref<1x48xf32, #tpu.memory_space<vmem>>, vector<1x48xf32>
    %21 = vector.broadcast %20 : vector<1x48xf32> to vector<8x48xf32>
    %22 = arith.addf %19, %21 : vector<8x48xf32>
    %c0_17 = arith.constant 0 : index
    %c0_18 = arith.constant 0 : index
    %23 = vector.load %arg8[%c0_17, %c0_18] : memref<8x48xf32, #tpu.memory_space<vmem>>, vector<8x48xf32>
    tpu.vector_store %arg8[%c0_17, %c0_18], %22 {strides = array<i32>} : memref<8x48xf32, #tpu.memory_space<vmem>>, vector<8x48xf32>,
    return
  }
  func.func @transform_0(%arg0: i32) -> (i32, i32) {
    %c0_i32 = arith.constant 0 : i32
    %c0_i32_0 = arith.constant 0 : i32
    return %arg0, %c0_i32 : i32, i32
  }
  func.func @transform_1(%arg0: i32) -> (i32, i32) {
    %c0_i32 = arith.constant 0 : i32
    %c0_i32_0 = arith.constant 0 : i32
    %c0_i32_1 = arith.constant 0 : i32
    return %c0_i32, %c0_i32_0 : i32, i32
  }
  func.func @transform_2(%arg0: i32) -> (i32, i32) {
    %c0_i32 = arith.constant 0 : i32
    %c0_i32_0 = arith.constant 0 : i32
    %c0_i32_1 = arith.constant 0 : i32
    return %c0_i32, %c0_i32_0 : i32, i32
  }
  func.func @transform_3(%arg0: i32) -> (i32, i32) {
    %c0_i32 = arith.constant 0 : i32
    %c0_i32_0 = arith.constant 0 : i32
    %c0_i32_1 = arith.constant 0 : i32
    return %c0_i32, %c0_i32_0 : i32, i32
  }
  func.func @transform_4(%arg0: i32) -> (i32, i32) {
    %c0_i32 = arith.constant 0 : i32
    %c0_i32_0 = arith.constant 0 : i32
    %c0_i32_1 = arith.constant 0 : i32
    return %c0_i32, %c0_i32_0 : i32, i32
  }
  func.func @transform_5(%arg0: i32) -> (i32, i32) {
    %c0_i32 = arith.constant 0 : i32
    %c0_i32_0 = arith.constant 0 : i32
    %c0_i32_1 = arith.constant 0 : i32
    return %c0_i32, %c0_i32_0 : i32, i32
  }
  func.func @transform_6(%arg0: i32) -> (i32, i32) {
    %c0_i32 = arith.constant 0 : i32
    %c0_i32_0 = arith.constant 0 : i32
    %c0_i32_1 = arith.constant 0 : i32
    return %c0_i32, %c0_i32_0 : i32, i32
  }
  func.func @transform_7(%arg0: i32) -> (i32, i32) {
    %c0_i32 = arith.constant 0 : i32
    %c0_i32_0 = arith.constant 0 : i32
    return %arg0, %c0_i32 : i32, i32
  }
}

</mosaic_0001>

<bundles_post_ra>
// kernel: tpu_custom_call.1
= control target key start
LH: loop header
LB: loop body
LE: loop exit
PB: predicated region body
PF: predicated region fallthrough
CT: control target
= control target key end

     0   :  { %v378_v1 = vmov 0.0   ;;  %vm379_vm0 = vmmov 0   ;;  %vm53_vm1 = vcmask 261120   ;;  %s471_s0 = inlined_call_operand.vmem [shape: f32[8,32], index: 0, kind: input, shape index: {}]   ;;  %s472_s1 = inlined_call_operand.vmem [shape: bf16[32,64], index: 1, kind: input, shape index: {}]   ;;  %s473_s2 = inlined_call_operand.vmem [shape: f32[1,64], index: 2, kind: input, shape index: {}]   ;;  %s474_s3 = inlined_call_operand.vmem [shape: bf16[64,64], index: 3, kind: input, shape index: {}]   ;;  %s475_s4 = inlined_call_operand.vmem [shape: f32[1,64], index: 4, kind: input, shape index: {}]   ;;  %s476_s5 = inlined_call_operand.vmem [shape: bf16[64,48], index: 5, kind: input, shape index: {}]   ;;  %s477_s6 = inlined_call_operand.vmem [shape: f32[1,48], index: 6, kind: input, shape index: {}]   ;;  %s478_s7 = inlined_call_operand.hbm [shape: f32[8,48], index: 7, kind: output, shape index: {}]  }
   0x1   :  { %v346_v0 = vld [vmem:[%s472_s1 + $0x8] sm:$0xff]   ;;  %311 = vmatprep.subr.bf16.mxu0 %v378_v1  ;;  %v347_v2 = vld [vmem:[%s472_s1] sm:$0xff]   ;;  %319 = vmatprep.subr.bf16.mxu1 %v378_v1  ;;  %v348_v4 = vld [vmem:[%s474_s3 + $0x18] sm:$0xff]  }
   0x2   :  { %312 = vmatpush3.bf16.msra.mxu0 %v346_v0  ;;  %315 = vmatprep.mubr.msk.bf16.mxu0 %vm379_vm0, %v378_v1  ;;  %v28_v3 = vld [vmem:[%s471_s0] sm:$0xff]  ;;  %v349_v5 = vld [vmem:[%s474_s3 + $0x10] sm:$0xff]  }
   0x3   :  { %313 = vmatprep.subr.bf16.mxu0 %v378_v1  ;;  %327 = vmatprep.mubr.msk.bf16.mxu1 %vm379_vm0, %v378_v1  ;;  %v29_v6 = vpack.c.bf16 %v28_v3, %v28_v3 }
   0x4   :  { %320 = vmatpush3.bf16.msra.mxu1 %v348_v4 }
   0x5   :  { %321 = vmatprep.subr.bf16.mxu1 %v378_v1 }
   0x6   :  { %314 = vmatpush3.bf16.msra.mxu0 %v347_v2 }
   0x7   :  { %331 = vmatprep.subr.bf16.mxu0 %v378_v1 }
   0x8   :  { %12 = vsyncpa [#allocation3], 0  ;;  %322 = vmatpush3.bf16.msra.mxu1 %v349_v5  ;;  %v350_v7 = vld [vmem:[%s474_s3 + $0x8] sm:$0xff]   ;;  %v351_v8 = vld [vmem:[%s474_s3] sm:$0xff]   ;;  %vm138_vm2 = vcmask 523264   ;;  %s380_s25 = smov [#allocation2]  }
   0x9   :  { %316 = vmatmul.mubr.msk.bf16.vlgmr.msra.gmra.mxu0 %vm53_vm1, %v29_v6  ;;  %323 = vmatprep.subr.bf16.mxu1 %v378_v1  ;;  %v352_v9 = vld [vmem:[%s476_s5 + $0x18] sm:$0xff]   ;;  %v353_v10 = vld [vmem:[%s476_s5 + $0x10] sm:$0xff]   ;;  %v282_v11 = vld [vmem:[%s473_s2] ss:$0 sm:$0xff]  ;;  %vm266_vm3 = vcmask 392192  }
   0xa   :  { %339 = vmatprep.mubr.msk.bf16.mxu0 %vm379_vm0, %v378_v1  ;;  %332 = vmatpush3.bf16.msra.mxu0 %v352_v9  ;;  %v354_v19 = vld [vmem:[%s476_s5 + $0x8] sm:$0xff]   ;;  %v355_v20 = vld [vmem:[%s476_s5] sm:$0xff]   ;;  %s274_s5 = sshll.u32 %s380_s25, 4  ;;  %s275_s5 = int_to_ptr.vmem [resolvable:$true] %s274_s5 }
   0xb   :  { %333 = vmatprep.subr.bf16.mxu0 %v378_v1  ;;  %v286_v21 = vld [vmem:[%s475_s4] ss:$0 sm:$0xff]  ;;  %s356_s4 = scalar_lea.vmem %s275_s5, 128  ;;  %p361_p1 = scmp.lt.s32.totalorder %s275_s5, %s275_s5 }
   0xc   :  { %324 = vmatpush3.bf16.msra.mxu1 %v350_v7  ;;  %v292_v29 = vld [vmem:[%s477_s6] ss:$0 sm:$0xff]  ;;  %p357_p0 = scmp.ne.s32.totalorder %s275_s5, %s356_s4  ;;  %p362_p2 = scmp.lt.s32.totalorder %s356_s4, %s356_s4 }
   0xd   :  { %325 = vmatprep.subr.bf16.mxu1 %v378_v1 }
   0xe   :  { %334 = vmatpush3.bf16.msra.mxu0 %v353_v10  ;;  %p363_p3 = por %p362_p2, %p361_p1 }
   0xf   :  { %335 = vmatprep.subr.bf16.mxu0 %v378_v1 }
  0x10   :  { %326 = vmatpush3.bf16.msra.mxu1 %v351_v8  ;;  %p364_p4 = pnand %p363_p3, %p357_p0 }
  0x12   :  { %336 = vmatpush3.bf16.msra.mxu0 %v354_v19 }
  0x13   :  { %337 = vmatprep.subr.bf16.mxu0 %v378_v1 }
  0x16   :  { %338 = vmatpush3.bf16.msra.mxu0 %v355_v20 }
  0xc9   :  { %v91_v12 = vpop.f32.mrf.mxu0 }
  0xca   :  { %v92_v13 = vadd.f32 %v282_v11, %v91_v12 }
  0xcb   :  { %v317_v14 = vpop.f32.mrf.mxu0 }
  0xcc   :  { %v97_v15 = vmax.f32 %v92_v13, 0.0 }
  0xcd   :  { %v94_v16 = vpop.f32.mrf.mxu0 }
  0xce   :  { %v98_v17 = vpack.c.bf16 %v97_v15, %v97_v15 }
  0xcf   :  { %v318_v18 = vpop.f32.mrf.mxu0 }
  0xd0   :  { %328 = vmatmul.mubr.msk.bf16.vlgmr.msra.gmra.mxu1 %vm138_vm2, %v98_v17 }
 0x190   :  { %v176_v22 = vpop.f32.mrf.mxu1 }
 0x191   :  { %v177_v23 = vadd.f32 %v286_v21, %v176_v22 }
 0x192   :  { %v329_v24 = vpop.f32.mrf.mxu1 }
 0x193   :  { %v182_v25 = vmax.f32 %v177_v23, 0.0 }
 0x194   :  { %v179_v26 = vpop.f32.mrf.mxu1 }
 0x195   :  { %v183_v27 = vpack.c.bf16 %v182_v25, %v182_v25 }
 0x196   :  { %v330_v28 = vpop.f32.mrf.mxu1 }
 0x197   :  { %340 = vmatmul.mubr.msk.bf16.vlgmr.msra.gmra.mxu0 %vm138_vm2, %v183_v27 }
 0x257   :  { %v260_v30 = vpop.f32.mrf.mxu0 }
 0x258   :  { %v261_v31 = vadd.f32 %v292_v29, %v260_v30 }
 0x259   :  { %v341_v32 = vpop.f32.mrf.mxu0 }
 0x25a   :  { %267 = vst.msk [vmem:[#allocation2] sm:$0xff] %vm266_vm3, %v261_v31 }
 0x25b   :  { %v263_v33 = vpop.f32.mrf.mxu0 }
 0x25c   :  { %367 = shalt.err (!%p364_p4)
}
 0x25d   :  { %277 = dma.vmem_to_hbm [thread:$0]  %s275_s5, 128, %s478_s7, [#allocation3]   ;;  %v342_v34 = vpop.f32.mrf.mxu0 }
 0x25e   :  { %376 = dma.done.wait [#allocation3], 128  }
 0x25f   :  { %377 = vsyncadd [#allocation3], 4294967168 }
 0x260   :  { %281 = vsyncpa [#allocation3], 1 }

</bundles_post_ra>
